<compile_context>
chip_gen: v7x
topology: tpu7x:2x2x1
jax: 0.10.0
libtpu: 0.0.40
codegen_flags: <defaults>
</compile_context>

<pallas_src>
import jax
import jax.numpy as jnp
from jax.experimental import pallas as pl
from jax.experimental.pallas import tpu as pltpu


def _round_up(x, m):
    return ((x + m - 1) // m) * m


def _sublane_pack(dtype):
    item = jnp.dtype(dtype).itemsize
    return {4: 8, 2: 16, 1: 32}.get(item, 8)


def _device_defaults():
    """Generation-aware tile / VMEM defaults (perf only; conservative fallback)."""
    kind = ""
    try:
        kind = jax.devices()[0].device_kind.lower()
    except Exception:
        pass
    if "v7" in kind:
        # 64 MiB VMEM/TC: buy a bigger row tile by shrinking the F chunk
        # (weight arithmetic intensity is independent of tf) and dropping the
        # f32 acc scratch for f32 outputs (see kernel).  x/out stay
        # double-buffered; the tf=256 + no-scratch budget already fits 56 MiB.
        return dict(tm=768, tf=256, vmem_limit=56 * 1024 * 1024)
    if "v6" in kind or "v5p" in kind:
        # 128 MiB VMEM: tm=1024 flips the kernel compute-bound on v6e.
        return dict(tm=1024, tf=512, vmem_limit=100 * 1024 * 1024)
    if "v5" in kind:
        # v5e: already compute-bound at tm=512; larger tiles only add pressure.
        return dict(tm=512, tf=512, vmem_limit=96 * 1024 * 1024)
    # Unknown chip: conservative, known-good configuration.
    return dict(tm=512, tf=512, vmem_limit=48 * 1024 * 1024)


def _ffn_kernel(x_ref, w1_ref, b1_ref, w2_ref, b2_ref, o_ref, *scratch):
    # x_ref : (tm, H)   activation row tile (native dtype, cast for the MXU)
    # w1_ref: (H, tf)   W1 F-chunk            b1_ref: (1, tf)  f32
    # w2_ref: (tf, H)   W2 F-chunk            b2_ref: (1, H)   f32
    # o_ref : (tm, H)   output tile
    # scratch = (acc_ref,) f32 when o_ref's dtype is not f32; otherwise o_ref
    # itself is the resident f32 accumulator (saves tm*H*4 bytes of VMEM).
    acc_ref = scratch[0] if scratch else o_ref
    f = pl.program_id(1)

    @pl.when(f == 0)
    def _():
        acc_ref[...] = jnp.zeros_like(acc_ref)

    x = x_ref[...].astype(w1_ref.dtype)
    h = jnp.dot(x, w1_ref[...], preferred_element_type=jnp.float32)
    h = jnp.maximum(h + b1_ref[...], 0.0)          # bias + ReLU in f32
    # TODO(synk): dropout is identity here (eval mode); training-mode dropout
    # would use pltpu.prng_seed + pltpu.stateful_bernoulli on `h` and output.
    acc_ref[...] += jnp.dot(h.astype(w2_ref.dtype), w2_ref[...],
                            preferred_element_type=jnp.float32)

    @pl.when(f == pl.num_programs(1) - 1)
    def _():
        o_ref[...] = (acc_ref[...] + b2_ref[...]).astype(o_ref.dtype)


def make_positionwise_feed_forward(w1, b1, w2, b2, *, tm=None, tf=None,
                                   compute_dtype=jnp.bfloat16,
                                   vmem_limit_bytes=None):
    """Build a jitted FFN forward for fixed weights.

    w1:(H,F) b1:(F,) w2:(F,H) b2:(H,).  Weights are padded / cast ONCE here,
    off the per-call hot path."""
    cfg = _device_defaults()
    tm = int(tm if tm is not None else cfg["tm"])
    tf = int(tf if tf is not None else cfg["tf"])
    vmem_limit = int(vmem_limit_bytes if vmem_limit_bytes is not None
                     else cfg["vmem_limit"])

    H, F = w1.shape
    assert w2.shape == (F, H) and b1.shape == (F,) and b2.shape == (H,)
    cdt = jnp.dtype(compute_dtype if compute_dtype is not None else w1.dtype)

    # F chunk: requested tf rounded to a lane multiple; pad F up to a multiple
    # of it (no gcd collapse for non-power-of-two F).
    tf_eff = min(_round_up(tf, 128), _round_up(F, 128))
    Fp = _round_up(F, tf_eff)
    n_f = Fp // tf_eff

    # One-time weight prep.  Zero-padding F is benign: padded b1 entries are 0,
    # so the padded hidden units are relu(0)=0 and hit zero rows of W2.
    w1p = jnp.pad(w1, ((0, 0), (0, Fp - F))).astype(cdt)
    w2p = jnp.pad(w2, ((0, Fp - F), (0, 0))).astype(cdt)
    b1p = jnp.pad(b1, (0, Fp - F)).reshape(1, Fp).astype(jnp.float32)
    b2p = b2.reshape(1, H).astype(jnp.float32)
    w_item = cdt.itemsize

    @jax.jit
    def _forward(x, w1p, b1p, w2p, b2p):
        B, S, Hx = x.shape
        assert Hx == H, f"expected hidden dim {H}, got {Hx}"
        rows = B * S
        x2d = x.reshape(rows, H)                 # metadata-only reshape

        pack = _sublane_pack(x.dtype)            # 8 f32 / 16 bf16 / 32 int8
        tm_eff = max(pack, min(tm, _round_up(rows, pack)))
        # Keep >= 2 row tiles when possible so both TCs (megacore / v7x) get
        # work; the ragged tail is masked by Pallas at the grid edge.
        if pl.cdiv(rows, tm_eff) == 1 and rows > pack:
            tm_eff = _round_up(pl.cdiv(rows, 2), pack)
        n_rows = pl.cdiv(rows, tm_eff)

        out_dtype = x.dtype
        use_scratch = jnp.dtype(out_dtype) != jnp.dtype(jnp.float32)
        scratch_shapes = ([pltpu.VMEM((tm_eff, H), jnp.float32)]
                          if use_scratch else [])

        x_item = jnp.dtype(x.dtype).itemsize
        cost = pl.CostEstimate(
            flops=2 * 2 * rows * H * F,
            transcendentals=0,
            bytes_accessed=int(rows * H * 2 * x_item              # x in + out
                               + n_rows * (2 * H * Fp * w_item    # W1,W2 per row tile
                                           + (Fp + H) * 4)),      # biases (f32)
        )

        out2d = pl.pallas_call(
            _ffn_kernel,
            out_shape=jax.ShapeDtypeStruct((rows, H), out_dtype),
            grid_spec=pltpu.PrefetchScalarGridSpec(
                num_scalar_prefetch=0,
                grid=(n_rows, n_f),
                in_specs=[
                    pl.BlockSpec((tm_eff, H), lambda i, f: (i, 0)),   # x rows
                    pl.BlockSpec((H, tf_eff), lambda i, f: (0, f)),   # W1 chunk
                    pl.BlockSpec((1, tf_eff), lambda i, f: (0, f)),   # b1 chunk
                    pl.BlockSpec((tf_eff, H), lambda i, f: (f, 0)),   # W2 chunk
                    pl.BlockSpec((1, H), lambda i, f: (0, 0)),        # b2
                ],
                out_specs=pl.BlockSpec((tm_eff, H), lambda i, f: (i, 0)),
                scratch_shapes=scratch_shapes,
            ),
            compiler_params=pltpu.CompilerParams(
                dimension_semantics=("parallel", "arbitrary"),
                vmem_limit_bytes=vmem_limit,
            ),
            cost_estimate=cost,
        )(x2d, w1p, b1p, w2p, b2p)

        return out2d.reshape(B, S, H)

    def forward(x):
        return _forward(x, w1p, b1p, w2p, b2p)

    return forward


def positionwise_feed_forward(x, w1, b1, w2, b2, **kwargs):
    """One-shot convenience wrapper (re-prepares weights on every call;
    prefer make_positionwise_feed_forward for repeated use)."""
    return make_positionwise_feed_forward(w1, b1, w2, b2, **kwargs)(x)


def _reference(x, w1, b1, w2, b2):
    x = x.astype(jnp.float32)
    h = jnp.maximum(jnp.einsum("bsh,hf->bsf", x, w1.astype(jnp.float32))
                    + b1.astype(jnp.float32), 0.0)
    return (jnp.einsum("bsf,fh->bsh", h, w2.astype(jnp.float32))
            + b2.astype(jnp.float32))


if __name__ == "__main__":
    key = jax.random.PRNGKey(0)

    def init_params(k, H, F):
        # Deterministic "init_weight"-style parameters.  PyTorch conv1 weight
        # is (F,H,1) -> stored pre-transposed as (H,F); conv2 (H,F,1) -> (F,H).
        k1, k2, k3, k4 = jax.random.split(k, 4)
        w1 = jax.random.normal(k1, (H, F), jnp.float32) * (1.0 / jnp.sqrt(H))
        b1 = jax.random.normal(k2, (F,), jnp.float32) * 0.01
        w2 = jax.random.normal(k3, (F, H), jnp.float32) * (1.0 / jnp.sqrt(F))
        b2 = jax.random.normal(k4, (H,), jnp.float32) * 0.01
        return w1, b1, w2, b2

    # --- Test 1: module-sized shapes, exact f32 path (o_ref as accumulator) --
    B, S, H, F = 2, 8, 32, 64
    kx, kp = jax.random.split(key)
    x = jax.random.normal(kx, (B, S, H), jnp.float32)
    w1, b1, w2, b2 = init_params(kp, H, F)
    ffn = make_positionwise_feed_forward(w1, b1, w2, b2,
                                         compute_dtype=jnp.float32)
    out = jax.block_until_ready(ffn(x))
    ref = _reference(x, w1, b1, w2, b2)
    assert out.shape == (B, S, H)
    assert jnp.allclose(out, ref, atol=1e-5, rtol=1e-5), "f32 mismatch"

    # --- Test 2: ragged rows + multi-chunk F reduction (F > tf), exact f32 ---
    B2, S2, H2, F2 = 2, 7, 32, 320        # rows=14 (masked tail), 3 F chunks
    kx2, kp2 = jax.random.split(kp)
    x2 = jax.random.normal(kx2, (B2, S2, H2), jnp.float32)
    p2 = init_params(kp2, H2, F2)
    ffn2 = make_positionwise_feed_forward(*p2, tf=128,
                                          compute_dtype=jnp.float32)
    out2 = jax.block_until_ready(ffn2(x2))
    ref2 = _reference(x2, *p2)
    assert out2.shape == (B2, S2, H2)
    assert jnp.allclose(out2, ref2, atol=1e-5, rtol=1e-5), "multi-chunk mismatch"

    # --- Test 3: bf16 MXU path + f32 VMEM accumulator (bf16 output) ----------
    kp3 = jax.random.split(kp2)[0]
    p3 = init_params(kp3, H, 256)
    x3 = x.astype(jnp.bfloat16)
    ffn3 = make_positionwise_feed_forward(*p3, tf=128,
                                          compute_dtype=jnp.bfloat16)
    out3 = jax.block_until_ready(ffn3(x3))
    ref3 = _reference(x3, *p3)
    assert out3.shape == (B, S, H) and out3.dtype == jnp.bfloat16
    assert jnp.allclose(out3.astype(jnp.float32), ref3,
                        atol=5e-2, rtol=5e-2), "bf16 mismatch"

    print("KERNEL_OK")
</pallas_src>

<mosaic_0001>
module attributes {stable_mosaic.version = 11 : i64} {
  func.func @_ffn_kernel(%arg0: i32, %arg1: i32, %arg2: memref<8x32xf32, #tpu.memory_space<vmem>>, %arg3: memref<32x128xf32, #tpu.memory_space<vmem>>, %arg4: memref<1x128xf32, #tpu.memory_space<vmem>>, %arg5: memref<128x32xf32, #tpu.memory_space<vmem>>, %arg6: memref<1x32xf32, #tpu.memory_space<vmem>>, %arg7: memref<8x32xf32, #tpu.memory_space<vmem>>) attributes {dimension_semantics = [#tpu.dimension_semantics<parallel>, #tpu.dimension_semantics<arbitrary>], iteration_bounds = array<i64: 2, 1>, scalar_prefetch = 0 : i64, scratch_operands = 0 : i64, tpu.core_type = #tpu.core_type<tc>, window_params = [{transform_indices = @transform_0, window_bounds = array<i64: 8, 32>}, {transform_indices = @transform_1, window_bounds = array<i64: 32, 128>}, {transform_indices = @transform_2, window_bounds = array<i64: 1, 128>}, {transform_indices = @transform_3, window_bounds = array<i64: 128, 32>}, {pipeline_mode = #tpu.pipeline_mode<synchronous>, transform_indices = @transform_4, window_bounds = array<i64: 1, 32>}, {transform_indices = @transform_5, window_bounds = array<i64: 8, 32>}]} {
    %c0_i32 = arith.constant 0 : i32
    %0 = arith.cmpi eq, %arg1, %c0_i32 : i32
    %1 = arith.extui %0 : i1 to i32
    %c0_i32_0 = arith.constant 0 : i32
    %2 = arith.cmpi ne, %1, %c0_i32_0 : i32
    scf.if %2 {
      %cst_16 = arith.constant 0.000000e+00 : f32
      %19 = vector.broadcast %cst_16 : f32 to vector<8x32xf32>
      %c0_17 = arith.constant 0 : index
      %c0_18 = arith.constant 0 : index
      %20 = vector.load %arg7[%c0_17, %c0_18] : memref<8x32xf32, #tpu.memory_space<vmem>>, vector<8x32xf32>
      tpu.vector_store %arg7[%c0_17, %c0_18], %19 {strides = array<i32>} : memref<8x32xf32, #tpu.memory_space<vmem>>, vector<8x32xf32>,
    } else {
    }
    %c0 = arith.constant 0 : index
    %c0_1 = arith.constant 0 : index
    %3 = vector.load %arg2[%c0, %c0_1] : memref<8x32xf32, #tpu.memory_space<vmem>>, vector<8x32xf32>
    %c0_2 = arith.constant 0 : index
    %c0_3 = arith.constant 0 : index
    %4 = vector.load %arg3[%c0_2, %c0_3] : memref<32x128xf32, #tpu.memory_space<vmem>>, vector<32x128xf32>
    %cst = arith.constant dense<0.000000e+00> : vector<8x128xf32>
    %5 = tpu.matmul %3, %4, %cst {dimension_numbers = #tpu.dot_dimension_numbers<[1], [0], [0], [1], [0, 0, 1, 1], [], []>} : vector<8x32xf32>, vector<32x128xf32>, vector<8x128xf32> -> vector<8x128xf32>
    %c0_4 = arith.constant 0 : index
    %c0_5 = arith.constant 0 : index
    %6 = vector.load %arg4[%c0_4, %c0_5] : memref<1x128xf32, #tpu.memory_space<vmem>>, vector<1x128xf32>
    %7 = vector.broadcast %6 : vector<1x128xf32> to vector<8x128xf32>
    %8 = arith.addf %5, %7 : vector<8x128xf32>
    %cst_6 = arith.constant 0.000000e+00 : f32
    %9 = vector.broadcast %cst_6 : f32 to vector<8x128xf32>
    %10 = arith.maximumf %8, %9 : vector<8x128xf32>
    %c0_7 = arith.constant 0 : index
    %c0_8 = arith.constant 0 : index
    %11 = vector.load %arg7[%c0_7, %c0_8] : memref<8x32xf32, #tpu.memory_space<vmem>>, vector<8x32xf32>
    %c0_9 = arith.constant 0 : index
    %c0_10 = arith.constant 0 : index
    %12 = vector.load %arg5[%c0_9, %c0_10] : memref<128x32xf32, #tpu.memory_space<vmem>>, vector<128x32xf32>
    %cst_11 = arith.constant dense<0.000000e+00> : vector<8x32xf32>
    %13 = tpu.matmul %10, %12, %cst_11 {dimension_numbers = #tpu.dot_dimension_numbers<[1], [0], [0], [1], [0, 0, 1, 1], [], []>} : vector<8x128xf32>, vector<128x32xf32>, vector<8x32xf32> -> vector<8x32xf32>
    %14 = arith.addf %11, %13 : vector<8x32xf32>
    %c0_12 = arith.constant 0 : index
    %c0_13 = arith.constant 0 : index
    %15 = vector.load %arg7[%c0_12, %c0_13] : memref<8x32xf32, #tpu.memory_space<vmem>>, vector<8x32xf32>
    tpu.vector_store %arg7[%c0_12, %c0_13], %14 {strides = array<i32>} : memref<8x32xf32, #tpu.memory_space<vmem>>, vector<8x32xf32>,
    %c0_i32_14 = arith.constant 0 : i32
    %16 = arith.cmpi eq, %arg1, %c0_i32_14 : i32
    %17 = arith.extui %16 : i1 to i32
    %c0_i32_15 = arith.constant 0 : i32
    %18 = arith.cmpi ne, %17, %c0_i32_15 : i32
    scf.if %18 {
      %c0_16 = arith.constant 0 : index
      %c0_17 = arith.constant 0 : index
      %19 = vector.load %arg7[%c0_16, %c0_17] : memref<8x32xf32, #tpu.memory_space<vmem>>, vector<8x32xf32>
      %c0_18 = arith.constant 0 : index
      %c0_19 = arith.constant 0 : index
      %20 = vector.load %arg6[%c0_18, %c0_19] : memref<1x32xf32, #tpu.memory_space<vmem>>, vector<1x32xf32>
      %21 = vector.broadcast %20 : vector<1x32xf32> to vector<8x32xf32>
      %22 = arith.addf %19, %21 : vector<8x32xf32>
      %c0_20 = arith.constant 0 : index
      %c0_21 = arith.constant 0 : index
      %23 = vector.load %arg7[%c0_20, %c0_21] : memref<8x32xf32, #tpu.memory_space<vmem>>, vector<8x32xf32>
      tpu.vector_store %arg7[%c0_20, %c0_21], %22 {strides = array<i32>} : memref<8x32xf32, #tpu.memory_space<vmem>>, vector<8x32xf32>,
    } else {
    }
    return
  }
  func.func @transform_0(%arg0: i32, %arg1: i32) -> (i32, i32) {
    %c0_i32 = arith.constant 0 : i32
    %c0_i32_0 = arith.constant 0 : i32
    return %arg0, %c0_i32 : i32, i32
  }
  func.func @transform_1(%arg0: i32, %arg1: i32) -> (i32, i32) {
    %c0_i32 = arith.constant 0 : i32
    %c0_i32_0 = arith.constant 0 : i32
    return %c0_i32, %arg1 : i32, i32
  }
  func.func @transform_2(%arg0: i32, %arg1: i32) -> (i32, i32) {
    %c0_i32 = arith.constant 0 : i32
    %c0_i32_0 = arith.constant 0 : i32
    return %c0_i32, %arg1 : i32, i32
  }
  func.func @transform_3(%arg0: i32, %arg1: i32) -> (i32, i32) {
    %c0_i32 = arith.constant 0 : i32
    %c0_i32_0 = arith.constant 0 : i32
    return %arg1, %c0_i32 : i32, i32
  }
  func.func @transform_4(%arg0: i32, %arg1: i32) -> (i32, i32) {
    %c0_i32 = arith.constant 0 : i32
    %c0_i32_0 = arith.constant 0 : i32
    %c0_i32_1 = arith.constant 0 : i32
    return %c0_i32, %c0_i32_0 : i32, i32
  }
  func.func @transform_5(%arg0: i32, %arg1: i32) -> (i32, i32) {
    %c0_i32 = arith.constant 0 : i32
    %c0_i32_0 = arith.constant 0 : i32
    return %arg0, %c0_i32 : i32, i32
  }
}

</mosaic_0001>

<bundles_post_ra>
// kernel: _forward.1
= control target key start
LH: loop header
LB: loop body
LE: loop exit
PB: predicated region body
PF: predicated region fallthrough
CT: control target
= control target key end

     0   :  { %10 = vsyncpa [#allocation3], 0  ;;  %s1084_s0 = inlined_call_operand.vmem [shape: f32[16,32], index: 0, kind: input, shape index: {}]   ;;  %s1085_s1 = inlined_call_operand.vmem [shape: f32[32,128], index: 1, kind: input, shape index: {}]   ;;  %s1086_s2 = inlined_call_operand.vmem [shape: f32[1,128], index: 2, kind: input, shape index: {}]   ;;  %s1087_s3 = inlined_call_operand.vmem [shape: f32[128,32], index: 3, kind: input, shape index: {}]   ;;  %s1088_s4 = inlined_call_operand.vmem [shape: f32[1,32], index: 4, kind: input, shape index: {}]   ;;  %s1089_s5 = inlined_call_operand.hbm [shape: f32[16,32], index: 5, kind: output, shape index: {}]  }
   0x1   :  { %12 = vsyncpa [#allocation3 + $0x1], 0  ;;  %s890_s18 = smov 0   ;;  %s892_s19 = smov 0  }
   0x2   :  { %s894_s20 = smov 0   ;;  %s896_s21 = smov 0  }
   0x3   :  { %s898_s22 = smov 0   ;;  %s900_s23 = smov 0  }
   0x4 LB: > { %s603_s24 = sadd.s32 4294967295, %s854_s23   ;;  %s604_s25 = sadd.s32 4294967294, %s854_s23   ;;  %s854_s23 = sphi %s900_s23, %s18_s23   ;;  %s850_s22 = sphi %s898_s22, %s1096_s22   ;;  %s846_s21 = sphi %s896_s21, %s1095_s21   ;;  %s842_s20 = sphi %s894_s20, %s1094_s20   ;;  %s838_s19 = sphi %s892_s19, %s1093_s19   ;;  %s834_s18 = sphi %s890_s18, %s1092_s18  }
   0x5   : > { %s30_s26 = sadd.s32 1, %s850_s22  ;;  %s162_s27 = sadd.s32 1, %s842_s20 }
   0x6   : > { %p32_p0 = scmp.ge.s32.totalorder %s30_s26, 2  ;;  %p172_p1 = scmp.ne.s32.totalorder %s842_s20, %s838_s19 }
   0x7   : > { %p173_p2 = scmp.eq.s32.totalorder %s603_s24, 1  ;;  %p178_p3 = scmp.ne.s32.totalorder %s838_s19, %s834_s18 }
   0x8   : > { %s1098_s26 = smov (%p32_p0, %s30_s26), 0  ;;  %p179_p5 = scmp.eq.s32.totalorder %s604_s25, 1 }
   0x9   : > { %p930_p4 = por %p173_p2, %p172_p1  ;;  %s159_s29 = ssub.s32 %s850_s22, %s1098_s26 }
   0xa   : > { %p610_p6 = scmp.ge.s32.totalorder %s854_s23, 1  ;;  %p160_p7 = scmp.eq.s32.totalorder %s159_s29, 0 }
   0xb   : > { %p937_p8 = por %p179_p5, %p178_p3  ;;  %p229_p9 = scmp.lt.s32.totalorder %s854_s23, 3 }
   0xc   : > { %s943_s6 = scalar_select %p160_p7, %s842_s20, %s162_s27  }
   0xd   : > { %p230_p10 = pnand %p610_p6, %p229_p9 }
   0xe   : > { %v292_v0 = vld [vmem:[%s1085_s1] sm:$0xff] (!%p230_p10)  ;;  %v293_v1 = vld [vmem:[%s1085_s1 + $0x8] sm:$0xff] (!%p230_p10)  ;;  %v294_v2 = vld [vmem:[%s1085_s1 + $0x10] sm:$0xff] (!%p230_p10)  ;;  %v856_v3 = vmov (!%p230_p10), 0.0|0.0   ;;  %vm857_vm0 = vmmov (!%p230_p10), 0   ;;  %v858_v6 = vmov (!%p230_p10), 0.0  }
   0xf   : > { %233 = sbr.rel (%p230_p10) target bundleno = 481 (0x1e1), region = 40  ;;  %688 = vmatprep.subr.bf16.mxu0 (!%p230_p10), %v856_v3  ;;  %v689_v4 = vpack.c.bf16 (!%p230_p10), %v293_v1, %v292_v0  ;;  %v295_v5 = vld [vmem:[%s1085_s1 + $0x18] sm:$0xff] (!%p230_p10)  ;;  %650 = vmatprep.mubr.msk.f32.mxu0 (!%p230_p10), %vm857_vm0, %v858_v6  ;;  %s265_s15 = sand.u32 (!%p230_p10), 1, %s838_s19   ;;  %v379_v7 = vld [vmem:[%s1087_s3] sm:$0xff] (!%p230_p10)  ;;  %v380_v8 = vld [vmem:[%s1087_s3 + $0x8] sm:$0xff] (!%p230_p10)  ;;  %vm289_vm1 = vcmask (!%p230_p10), 261120  }
  0x10   : > { %p268_p11 = scmp.lt.s32.totalorder (!%p230_p10), %s846_s21, 1  ;;  %s611_s27 = sshll.u32 (!%p230_p10), %s265_s15, 3  ;;  %694 = vmatprep.subr.bf16.mxu1 (!%p230_p10), %v856_v3  ;;  %v695_v9 = vpack.c.bf16 (!%p230_p10), %v380_v8, %v379_v7  ;;  %v381_v10 = vld [vmem:[%s1087_s3 + $0x10] sm:$0xff] (!%p230_p10)  ;;  %v382_v11 = vld [vmem:[%s1087_s3 + $0x18] sm:$0xff] (!%p230_p10)  ;;  %685 = vmatprep.mubr.msk.f32.mxu1 (!%p230_p10), %vm857_vm0, %v858_v6  ;;  %v692_v12 = vpack.c.bf16 (!%p230_p10), %v295_v5, %v294_v2  ;;  %v383_v14 = vld [vmem:[%s1087_s3 + $0x20] sm:$0xff] (!%p230_p10) }
  0x11   : > { %690 = vmatpush3.bf16.msra.mxu0 (!%p230_p10), %v689_v4  ;;  %s974_s11 = scalar_lea.vmem (!%p230_p10), [#allocation2], %s611_s27  ;;  %v698_v13 = vpack.c.bf16 (!%p230_p10), %v382_v11, %v381_v10  ;;  %v384_v15 = vld [vmem:[%s1087_s3 + $0x28] sm:$0xff] (!%p230_p10)  ;;  %v385_v18 = vld [vmem:[%s1087_s3 + $0x30] sm:$0xff] (!%p230_p10)  ;;  %v386_v19 = vld [vmem:[%s1087_s3 + $0x38] sm:$0xff] (!%p230_p10)  ;;  %s617_s25 = sshll.u32 (!%p230_p10), %s846_s21, 7 }
  0x12   : > { %691 = vmatprep.subr.bf16.mxu0 (!%p230_p10), %v856_v3  ;;  %290 = vst.msk [vmem:[%s974_s11] sm:$0xff] (!%p230_p10), %vm289_vm1, %v858_v6  ;;  %696 = vmatpush3.bf16.msra.mxu1 (!%p230_p10), %v695_v9  ;;  %v701_v17 = vpack.c.bf16 (!%p230_p10), %v384_v15, %v383_v14  ;;  %v704_v20 = vpack.c.bf16 (!%p230_p10), %v386_v19, %v385_v18  ;;  %v387_v21 = vld [vmem:[%s1087_s3 + $0x40] sm:$0xff] (!%p230_p10)  ;;  %v388_v22 = vld [vmem:[%s1087_s3 + $0x48] sm:$0xff] (!%p230_p10)  ;;  %v389_v24 = vld [vmem:[%s1087_s3 + $0x50] sm:$0xff] (!%p230_p10)  ;;  %s1033_s8 = scalar_lea.hbm (!%p230_p10), %s1089_s5, %s617_s25  ;;  %s481_s9 = scalar_lea.sflag (!%p230_p10), [#allocation3], %s265_s15 }
  0x13   : > { %697 = vmatprep.subr.bf16.mxu1 (!%p230_p10), %v856_v3  ;;  %v707_v23 = vpack.c.bf16 (!%p230_p10), %v388_v22, %v387_v21  ;;  %v390_v25 = vld [vmem:[%s1087_s3 + $0x58] sm:$0xff] (!%p230_p10)  ;;  %v391_v27 = vld [vmem:[%s1087_s3 + $0x60] sm:$0xff] (!%p230_p10)  ;;  %v392_v28 = vld [vmem:[%s1087_s3 + $0x68] sm:$0xff] (!%p230_p10) }
  0x14   : > { %v710_v26 = vpack.c.bf16 (!%p230_p10), %v390_v25, %v389_v24  ;;  %v713_v29 = vpack.c.bf16 (!%p230_p10), %v392_v28, %v391_v27  ;;  %v393_v30 = vld [vmem:[%s1087_s3 + $0x70] sm:$0xff] (!%p230_p10)  ;;  %v394_v31 = vld [vmem:[%s1087_s3 + $0x78] sm:$0xff] (!%p230_p10)  ;;  %v613_v33 = vld [vmem:[%s1086_s2] ss:$0 sm:$0xff] (!%p230_p10) }
  0x15   : > { %693 = vmatpush3.bf16.msra.mxu0 (!%p230_p10), %v692_v12  ;;  %v716_v32 = vpack.c.bf16 (!%p230_p10), %v394_v31, %v393_v30  ;;  %v615_v42 = vld [vmem:[%s1088_s4] ss:$0 sm:$0xff] (!%p230_p10) }
  0x16   : > { %s269_s10 = scalar_select %p268_p11, %s846_s21, 1  ;;  %699 = vmatpush3.bf16.msra.mxu1 %v698_v13 }
  0x17   : > { %700 = vmatprep.subr.bf16.mxu1 %v856_v3  ;;  %s859_s21 = smov [#allocation2]  }
  0x18   : > { %s612_s17 = sshll.u32 %s269_s10, 3  ;;  %s780_s12 = sshll.u32 %s859_s21, 4  ;;  %s781_s12 = int_to_ptr.vmem [resolvable:$false] %s780_s12 }
  0x19   : > { %s271_s27 = scalar_lea.vmem %s1084_s0, %s612_s17  ;;  %v378_v38 = vld [vmem:[%s974_s11] sm:$0xff]  ;;  %s782_s13 = scalar_lea.vmem %s781_s12, 256 }
  0x1a   : > { %v291_v16 = vld [vmem:[%s271_s27] sm:$0xff]  ;;  %702 = vmatpush3.bf16.msra.mxu1 %v701_v17  ;;  %s494_s27 = sshll.u32 %s974_s11, 4  ;;  %s1035_s27 = int_to_ptr.vmem [resolvable:$true] %s494_s27 }
  0x1b   : > { %651 = vmatmul.mubr.msk.f32.vlgmr.msra.gmra.mrb[0].mxu0 %vm289_vm1, %v291_v16  ;;  %703 = vmatprep.subr.bf16.mxu1 %v856_v3  ;;  %s776_s10 = scalar_lea.vmem %s1035_s27, 128  ;;  %p783_p1 = scmp.lt.s32.totalorder %s1035_s27, %s781_s12 }
  0x1c   : > { %p777_p12 = scmp.ne.s32.totalorder %s1035_s27, %s776_s10  ;;  %p784_p2 = scmp.lt.s32.totalorder %s782_s13, %s776_s10 }
  0x1e   : > { %705 = vmatpush3.bf16.msra.mxu1 %v704_v20  ;;  %p778_p13 = pnand %p777_p12, %p930_p4  ;;  %p785_p3 = por %p784_p2, %p783_p1 }
  0x1f   : > { %706 = vmatprep.subr.bf16.mxu1 %v856_v3 }
  0x20   : > { %p779_p0 = pneg %p778_p13 }
  0x22   : > { %708 = vmatpush3.bf16.msra.mxu1 %v707_v23  ;;  %p786_p5 = pnand %p785_p3, %p779_p0 }
  0x23   : > { %709 = vmatprep.subr.bf16.mxu1 %v856_v3 }
  0x26   : > { %711 = vmatpush3.bf16.msra.mxu1 %v710_v26 }
  0x27   : > { %712 = vmatprep.subr.bf16.mxu1 %v856_v3 }
  0x2a   : > { %714 = vmatpush3.bf16.msra.mxu1 %v713_v29 }
  0x2b   : > { %715 = vmatprep.subr.bf16.mxu1 %v856_v3 }
  0x2e   : > { %717 = vmatpush3.bf16.msra.mxu1 %v716_v32 }
  0xee   : > { %v373_v34 = vpop.f32.mrb[0].mxu0 }
  0xef   : > { %v374_v35 = vadd.f32 %v613_v33, %v373_v34  ;;  %v652_v36 = vpop.f32.mrb[1].mxu0 }
  0xf1   : > { %v377_v37 = vmax.f32 %v374_v35, 0.0 }
  0xf3   : > { %686 = vmatmul.mubr.f32.vlgmr.msra.gmra.mrb[0].mxu1 %v377_v37 }
 0x1c6   : > { %v461_v39 = vpop.f32.mrb[0].mxu1 }
 0x1c7   : > { %v465_v40 = vadd.f32 %v461_v39, %v378_v38  ;;  %v687_v41 = vpop.f32.mrb[1].mxu1 }
 0x1c9   : > { %466 = vst.msk [vmem:[%s974_s11] sm:$0xff] %vm289_vm1, %v465_v40 }
 0x1d0   : > { %v470_v43 = vld [vmem:[%s974_s11] sm:$0xff] }
 0x1d1   : > { %v478_v44 = vadd.f32 %v615_v42, %v470_v43 }
 0x1d3   : > { %479 = vst.msk [vmem:[%s974_s11] sm:$0xff] %vm289_vm1, %v478_v44 }
 0x1d4   : > { %789 = shalt.err (!%p786_p5)
}
 0x1d5   : > { %s790_s15 = scalar_lea.hbm %s1033_s8, 128  ;;  %s794_s16 = scalar_lea.hbm %s1089_s5, 256 }
 0x1d6   : > { %p791_p6 = scmp.ne.s32.totalorder %s1033_s8, %s790_s15  ;;  %p795_p10 = scmp.lt.u32.totalorder %s1033_s8, %s1089_s5 }
 0x1d7   : > { %p796_p11 = scmp.lt.u32.totalorder %s794_s16, %s790_s15  ;;  %p798_p13 = scmp.lt.u32.totalorder %s790_s15, %s1033_s8 }
 0x1d8   : > { %p792_p7 = pnand %p791_p6, %p930_p4 }
 0x1d9   : > { %p797_p12 = por %p796_p11, %p795_p10 }
 0x1da   : > { %p793_p9 = pneg %p792_p7 }
 0x1db   : > { %p799_p0 = por %p798_p13, %p797_p12 }
 0x1dd   : > { %p800_p1 = pnand %p799_p0, %p793_p9 }
 0x1df   : > { %803 = shalt.err (!%p800_p1)
}
 0x1e0   : > { %718 = dma.vmem_to_hbm [thread:$0]  (%p930_p4), %s1035_s27, 128, %s1033_s8, %s481_s9  }
 0x1e1 PF: > { %p724_p2 = scmp.ge.s32.totalorder %s854_s23, 2  ;;  %s506_s25 = sand.u32 1, %s834_s18  }
 0x1e2   : > { %s507_s29 = scalar_lea.sflag [#allocation3], %s506_s25 }
 0x1e3   : > { %p721_p3 = pnand %p724_p2, %p937_p8 }
 0x1e5   : > { %829 = dma.done.wait (!%p721_p3), %s507_s29, 128  }
 0x1e6   : > { %831 = vsyncadd (!%p721_p3), %s507_s29, 4294967168  ;;  %s18_s23 = sadd.s32 1, %s854_s23   ;;  %s1092_s18 = smov %s838_s19 }
 0x1e7   : > { %p15_p5 = scmp.ge.s32.totalorder %s18_s23, 4   ;;  %s1093_s19 = smov %s842_s20 }
 0x1e8   : > { %s1094_s20 = smov %s943_s6  ;;  %s1095_s21 = smov %s850_s22 }
 0x1e9   : > { %s1096_s22 = smov %s1098_s26  ;;  %17 = sbr.rel (!%p15_p5) target bundleno = 4 (0x4), region = 92 }
 0x1f0   :  { %512 = vsyncpa [#allocation3], 1 }
 0x1f1   :  { %514 = vsyncpa [#allocation3 + $0x1], 1 }

</bundles_post_ra>
